<compile_context>
chip_gen: v6e
topology: v6e:2x2x1
jax: 0.10.0
libtpu: 0.0.40
codegen_flags: <defaults>
</compile_context>

<pallas_src>
import functools

import jax
import jax.numpy as jnp
from jax.experimental import pallas as pl
from jax.experimental.pallas import tpu as pltpu


def _mix_kernel(lam_ref, x_ref, xwrap_ref, o_ref, *, use_roll):
    """out = lam * x + (1 - lam) * prev_row(x) for one (bb, tn) tile.

    lam_ref:   (1,)     float32 scalar in SMEM
    x_ref:     (bb, tn) current tile (VMEM)
    xwrap_ref: (1, tn)  global row preceding this tile's first row (wraps)
    o_ref:     (bb, tn) output tile
    """
    x = x_ref[...]
    lam = lam_ref[0].astype(x.dtype)   # mix natively in batch dtype (no f32 upcast)
    boundary = xwrap_ref[...]          # (1, tn); leading dim squeezed by BlockSpec
    bb = x.shape[0]
    if bb == 1:
        prev = boundary
    elif use_roll:
        # XLU sublane rotation: rolled[r] = x[(r - 1) % bb]; row 0 is then
        # replaced with the boundary row via one select.  No concat temp.
        rolled = pltpu.roll(x, shift=1, axis=0)
        row0 = jax.lax.broadcasted_iota(jnp.int32, x.shape, 0) == 0
        prev = jnp.where(row0, boundary, rolled)
    else:
        # Small / sublane-misaligned blocks only: cheap enough to concat.
        prev = jnp.concatenate([boundary, x[:-1, :]], axis=0)
    o_ref[...] = (lam * x + (1.0 - lam) * prev).astype(o_ref.dtype)


def _choose_tiles(B, N, itemsize, sub, target_bytes):
    """Pick (block_rows, block_cols) for the (B, N) mix.

    - Lane tile tn: whole row if even a minimal-height (sub-row) tile fits the
      target, else the largest multiple of 128 lanes that does (removes the
      "one flattened row fits VMEM" assumption).
    - Row tile bb: the LARGEST multiple of `sub` whose (bb, tn) tile fits the
      target; ragged last blocks are accepted (OOB output rows are masked).
    - If the grid collapses to a single block, split rows (or lanes) once so
      a v7x chip's two TensorCores both get work.
    """
    row_bytes = N * itemsize
    if sub * row_bytes <= target_bytes:
        tn = N
    else:
        tn = max(128, (target_bytes // (sub * itemsize)) // 128 * 128)
        tn = min(tn, N)
    tile_row_bytes = tn * itemsize
    bb = max(sub, (target_bytes // tile_row_bytes) // sub * sub)
    if bb >= B:
        bb = B
    if pl.cdiv(B, bb) * pl.cdiv(N, tn) < 2:
        if B > sub:
            bb = min(B, ((pl.cdiv(B, 2) + sub - 1) // sub) * sub)
        elif tn == N and N > 128:
            tn = min(N, ((pl.cdiv(N, 2) + 127) // 128) * 128)
    return bb, tn


def _mix_pallas(x2, lam_arr, *, block_rows=None, target_block_bytes=4 << 20):
    """out[i] = lam * x2[i] + (1 - lam) * x2[(i - 1) % B], x2 of shape (B, N)."""
    B, N = x2.shape
    itemsize = x2.dtype.itemsize
    sub = max(8, 32 // itemsize)   # sublane multiple: 8 f32, 16 bf16, 32 int8/fp8
    bb, tn = _choose_tiles(B, N, itemsize, sub, target_block_bytes)
    if block_rows is not None:
        bb = max(1, min(int(block_rows), B))
        if bb != B and bb % sub != 0:   # keep the (8,128)-style tiling legal
            bb = min(B, ((bb + sub - 1) // sub) * sub)
    grid = (pl.cdiv(B, bb), pl.cdiv(N, tn))
    use_roll = bb > 1 and bb % sub == 0

    # Free metadata view for the boundary-row BlockSpec: its trailing (1, N)
    # dims equal the array dims, so any (1, tn) window is a legal block.
    x_wrap_view = x2.reshape(B, 1, N)
    kernel = functools.partial(_mix_kernel, use_roll=use_roll)
    cost = pl.CostEstimate(
        flops=3 * B * N,
        transcendentals=0,
        bytes_accessed=(2 * B * N + grid[0] * grid[1] * tn) * itemsize,
    )
    return pl.pallas_call(
        kernel,
        out_shape=jax.ShapeDtypeStruct((B, N), x2.dtype),
        grid=grid,
        in_specs=[
            pl.BlockSpec(memory_space=pltpu.MemorySpace.SMEM),      # lam (1,)
            pl.BlockSpec((bb, tn), lambda i, j: (i, j)),            # current rows
            pl.BlockSpec((pl.Squeezed(), 1, tn),                    # row (i*bb - 1) mod B
                         lambda i, j: ((i * bb + B - 1) % B, 0, j)),
        ],
        out_specs=pl.BlockSpec((bb, tn), lambda i, j: (i, j)),
        compiler_params=pltpu.CompilerParams(
            dimension_semantics=("parallel", "parallel"),
            vmem_limit_bytes=48 * 1024 * 1024),
        cost_estimate=cost,
    )(lam_arr, x2, x_wrap_view)


@functools.partial(jax.jit,
                   static_argnames=("num_classes", "p", "alpha", "block_rows"))
def mixup(key, batch, target, *, num_classes, p=0.5, alpha=1.0, block_rows=None):
    """JAX/Pallas equivalent of MixUp.forward.

    batch:  (B, F, T) or (B, N) float tensor
    target: (B,) integer tensor
    Returns (mixed_batch, mixed_target); mixed_target is (B, num_classes)
    (or (B,) when num_classes == 1), in the batch dtype.
    """
    if batch.ndim not in (2, 3):
        raise ValueError(f"Batch ndim should be 3 (b, f, t) or 2 (b, n). Got {batch.ndim}")
    if target.ndim != 1:
        raise ValueError(f"Target ndim should be 1. Got {target.ndim}")

    k_coin, k_beta = jax.random.split(key)
    coin = jax.random.uniform(k_coin, ())
    lam_beta = jax.random.beta(k_beta, alpha, alpha)
    # coin >= p -> no transform, which is identical to lam = 1.0.
    lam = jnp.where(coin < p, lam_beta, 1.0).astype(jnp.float32)
    lam_arr = jnp.reshape(lam, (1,))

    # --- batch mix: Pallas kernel over the flattened, lane-dense layout ---
    B = batch.shape[0]
    x2 = batch.reshape(B, -1)
    mixed_batch = _mix_pallas(x2, lam_arr, block_rows=block_rows).reshape(batch.shape)

    # --- target mix: tiny (B, num_classes), stays in plain jnp (XLA fuses) ---
    if num_classes > 1:
        target_f = jax.nn.one_hot(target, num_classes, dtype=batch.dtype)
    else:
        target_f = target.astype(batch.dtype)
    lam_t = lam.astype(batch.dtype)
    mixed_target = lam_t * target_f + (1.0 - lam_t) * jnp.roll(target_f, 1, axis=0)

    return mixed_batch, mixed_target


if __name__ == "__main__":
    NUM_CLASSES = 5
    ALPHA = 1.0

    def reference(key, batch, target, num_classes, p, alpha):
        k_coin, k_beta = jax.random.split(key)
        coin = jax.random.uniform(k_coin, ())
        lam = jnp.where(coin < p, jax.random.beta(k_beta, alpha, alpha),
                        1.0).astype(jnp.float32)
        lam_b = lam.astype(batch.dtype)
        ref_batch = lam_b * batch + (1.0 - lam_b) * jnp.roll(batch, 1, axis=0)
        if num_classes > 1:
            t = jax.nn.one_hot(target, num_classes, dtype=batch.dtype)
        else:
            t = target.astype(batch.dtype)
        ref_target = lam_b * t + (1.0 - lam_b) * jnp.roll(t, 1, axis=0)
        return ref_batch.astype(batch.dtype), ref_target

    root = jax.random.PRNGKey(0)
    k = jax.random.split(root, 12)

    # 1) Small (b, f, t): single row block (B < sublane multiple), concat path.
    B, F, T = 4, 8, 16
    batch = jax.random.normal(k[0], (B, F, T), dtype=jnp.float32)
    target = jax.random.randint(k[1], (B,), 0, NUM_CLASSES, dtype=jnp.int32)
    mb, mt = mixup(k[2], batch, target, num_classes=NUM_CLASSES, p=0.5, alpha=ALPHA)
    jax.block_until_ready((mb, mt))
    rb, rt = reference(k[2], batch, target, NUM_CLASSES, 0.5, ALPHA)
    assert mb.shape == (B, F, T) and mb.dtype == jnp.float32
    assert mt.shape == (B, NUM_CLASSES) and mt.dtype == jnp.float32
    assert jnp.allclose(mb, rb, atol=1e-6), float(jnp.max(jnp.abs(mb - rb)))
    assert jnp.allclose(mt, rt, atol=1e-6)

    # 2) Multi row-block, ragged last block, cross-block wrap row, roll path
    #    (bb = 8 is a sublane multiple); N = 800 not a multiple of 128; p = 1.0
    #    guarantees the Beta mix is actually applied.
    B2, F2, T2 = 12, 8, 100
    batch2 = jax.random.normal(k[3], (B2, F2, T2), dtype=jnp.float32)
    target2 = jax.random.randint(k[4], (B2,), 0, NUM_CLASSES, dtype=jnp.int32)
    mb2, mt2 = mixup(k[5], batch2, target2, num_classes=NUM_CLASSES, p=1.0,
                     alpha=ALPHA, block_rows=8)
    jax.block_until_ready((mb2, mt2))
    rb2, rt2 = reference(k[5], batch2, target2, NUM_CLASSES, 1.0, ALPHA)
    assert jnp.allclose(mb2, rb2, atol=1e-6), float(jnp.max(jnp.abs(mb2 - rb2)))
    assert jnp.allclose(mt2, rt2, atol=1e-6)

    # 3) Small batch, N > 128: the lane axis is split into two blocks (v7x
    #    megacore path), last lane block ragged.
    B3, F3, T3 = 4, 8, 50
    batch3 = jax.random.normal(k[6], (B3, F3, T3), dtype=jnp.float32)
    target3 = jax.random.randint(k[7], (B3,), 0, NUM_CLASSES, dtype=jnp.int32)
    mb3, mt3 = mixup(k[8], batch3, target3, num_classes=NUM_CLASSES, p=1.0, alpha=ALPHA)
    jax.block_until_ready((mb3, mt3))
    rb3, rt3 = reference(k[8], batch3, target3, NUM_CLASSES, 1.0, ALPHA)
    assert jnp.allclose(mb3, rb3, atol=1e-6), float(jnp.max(jnp.abs(mb3 - rb3)))
    assert jnp.allclose(mt3, rt3, atol=1e-6)

    # 4) bf16 batch: native-dtype compute (no f32 upcast) + bf16 sublane roll.
    B4, F4, T4 = 16, 8, 128
    batch4 = jax.random.normal(k[9], (B4, F4, T4), dtype=jnp.bfloat16)
    target4 = jax.random.randint(k[10], (B4,), 0, NUM_CLASSES, dtype=jnp.int32)
    mb4, mt4 = mixup(k[11], batch4, target4, num_classes=NUM_CLASSES, p=1.0, alpha=ALPHA)
    jax.block_until_ready((mb4, mt4))
    rb4, rt4 = reference(k[11], batch4, target4, NUM_CLASSES, 1.0, ALPHA)
    assert mb4.dtype == jnp.bfloat16 and mt4.dtype == jnp.bfloat16
    assert jnp.allclose(mb4.astype(jnp.float32), rb4.astype(jnp.float32), atol=0.12)
    assert jnp.allclose(mt4.astype(jnp.float32), rt4.astype(jnp.float32), atol=0.02)

    print("KERNEL_OK")
</pallas_src>

<mosaic_0001>
module attributes {stable_mosaic.version = 11 : i64} {
  func.func @_mix_kernel(%arg0: i32, %arg1: i32, %arg2: memref<1xf32, #tpu.memory_space<smem>>, %arg3: memref<4x128xf32, #tpu.memory_space<vmem>>, %arg4: memref<1x1x128xf32, #tpu.memory_space<vmem>>, %arg5: memref<4x128xf32, #tpu.memory_space<vmem>>) attributes {dimension_semantics = [#tpu.dimension_semantics<parallel>, #tpu.dimension_semantics<parallel>], iteration_bounds = array<i64: 1, 1>, scalar_prefetch = 0 : i64, scratch_operands = 0 : i64, tpu.core_type = #tpu.core_type<tc>, window_params = [{transform_indices = @transform_0, window_bounds = array<i64: 1>}, {transform_indices = @transform_1, window_bounds = array<i64: 4, 128>}, {transform_indices = @transform_2, window_bounds = array<i64: 1, 1, 128>}, {transform_indices = @transform_3, window_bounds = array<i64: 4, 128>}]} {
    %c0 = arith.constant 0 : index
    %c0_0 = arith.constant 0 : index
    %0 = vector.load %arg3[%c0, %c0_0] : memref<4x128xf32, #tpu.memory_space<vmem>>, vector<4x128xf32>
    %c0_1 = arith.constant 0 : index
    %1 = memref.load %arg2[%c0_1] : memref<1xf32, #tpu.memory_space<smem>>
    %c0_2 = arith.constant 0 : index
    %c0_3 = arith.constant 0 : index
    %c0_4 = arith.constant 0 : index
    %2 = vector.load %arg4[%c0_2, %c0_3, %c0_4] : memref<1x1x128xf32, #tpu.memory_space<vmem>>, vector<1x1x128xf32>
    %3 = vector.shape_cast %2 : vector<1x1x128xf32> to vector<1x128xf32>
    %4 = vector.extract_strided_slice %0 {offsets = [0, 0], sizes = [3, 128], strides = [1, 1]} : vector<4x128xf32> to vector<3x128xf32>
    %5 = tpu.concatenate %3, %4 in 0 : vector<1x128xf32>, vector<3x128xf32> -> vector<4x128xf32>
    %6 = vector.broadcast %1 : f32 to vector<4x128xf32>
    %7 = arith.mulf %6, %0 : vector<4x128xf32>
    %cst = arith.constant 1.000000e+00 : f32
    %8 = arith.subf %cst, %1 : f32
    %9 = vector.broadcast %8 : f32 to vector<4x128xf32>
    %10 = arith.mulf %9, %5 : vector<4x128xf32>
    %11 = arith.addf %7, %10 : vector<4x128xf32>
    %c0_5 = arith.constant 0 : index
    %c0_6 = arith.constant 0 : index
    %12 = vector.load %arg5[%c0_5, %c0_6] : memref<4x128xf32, #tpu.memory_space<vmem>>, vector<4x128xf32>
    tpu.vector_store %arg5[%c0_5, %c0_6], %11 {strides = array<i32>} : memref<4x128xf32, #tpu.memory_space<vmem>>, vector<4x128xf32>,
    return
  }
  func.func @transform_0(%arg0: i32, %arg1: i32) -> i32 {
    %c0_i32 = arith.constant 0 : i32
    %c0_i32_0 = arith.constant 0 : i32
    return %c0_i32 : i32
  }
  func.func @transform_1(%arg0: i32, %arg1: i32) -> (i32, i32) {
    %c0_i32 = arith.constant 0 : i32
    return %arg0, %arg1 : i32, i32
  }
  func.func @transform_2(%arg0: i32, %arg1: i32) -> (i32, i32, i32) {
    %c4_i32 = arith.constant 4 : i32
    %0 = arith.muli %arg0, %c4_i32 : i32
    %c4_i32_0 = arith.constant 4 : i32
    %1 = arith.addi %0, %c4_i32_0 : i32
    %c1_i32 = arith.constant 1 : i32
    %2 = arith.subi %1, %c1_i32 : i32
    %c4_i32_1 = arith.constant 4 : i32
    %c0_i32 = arith.constant 0 : i32
    %3 = arith.cmpi eq, %c4_i32_1, %c0_i32 : i32
    %c1_i32_2 = arith.constant 1 : i32
    %4 = arith.select %3, %c1_i32_2, %c4_i32_1 : i32
    %5 = arith.remsi %2, %4 : i32
    %c0_i32_3 = arith.constant 0 : i32
    %6 = arith.cmpi ne, %5, %c0_i32_3 : i32
    %c0_i32_4 = arith.constant 0 : i32
    %7 = arith.cmpi slt, %5, %c0_i32_4 : i32
    %c0_i32_5 = arith.constant 0 : i32
    %8 = arith.cmpi slt, %4, %c0_i32_5 : i32
    %9 = arith.xori %7, %8 : i1
    %10 = arith.andi %9, %6 : i1
    %11 = arith.addi %5, %4 : i32
    %12 = arith.select %10, %11, %5 : i32
    %c0_i32_6 = arith.constant 0 : i32
    %c0_i32_7 = arith.constant 0 : i32
    return %12, %c0_i32_6, %arg1 : i32, i32, i32
  }
  func.func @transform_3(%arg0: i32, %arg1: i32) -> (i32, i32) {
    %c0_i32 = arith.constant 0 : i32
    return %arg0, %arg1 : i32, i32
  }
}

</mosaic_0001>

<bundles_post_ra>
// kernel: mixup.1
= control target key start
LH: loop header
LB: loop body
LE: loop exit
PB: predicated region body
PF: predicated region fallthrough
CT: control target
= control target key end

     0   :  { %vm100_vm0 = vcmask 1040384   ;;  %s152_s0 = inlined_call_operand.<no memory space> [shape: f32[1], index: 0, kind: input, shape index: {}]   ;;  %s153_s1 = inlined_call_operand.vmem [shape: f32[4,128], index: 1, kind: input, shape index: {}]   ;;  %s154_s2 = inlined_call_operand.vmem [shape: f32[4,1,128], index: 2, kind: input, shape index: {}]   ;;  %s155_s3 = inlined_call_operand.vmem [shape: f32[4,128], index: 3, kind: output, shape index: {}]  }
   0x1   :  { %v94_v0 = vld [vmem:[%s153_s1] sm:$0xf]  ;;  %v102_v2 = vstv %s152_s0  ;;  %s104_s20 = ssub.f32 1.0, %s152_s0 }
   0x2   :  { %v116_v1 = vld [vmem:[%s154_s2 + $0x3] sm:$0x1]  ;;  %v98_v3 = vrot.slane %v94_v0, 7  ;;  %v103_v4 = vmul.f32 %v102_v2, %v94_v0 }
   0x3   :  { %v105_v5 = vstv %s104_s20 }
   0x4   :  { %v101_v6 = vsel %vm100_vm0, %v116_v1, %v98_v3 }
   0x5   :  { %v106_v7 = vmul.f32 %v105_v5, %v101_v6 }
   0x7   :  { %v107_v8 = vadd.f32 %v106_v7, %v103_v4 }
   0x9   :  { %108 = vst [vmem:[%s155_s3] sm:$0xf] %v107_v8 }

</bundles_post_ra>
